<compile_context>
chip_gen: v5e
topology: v5e:2x2
jax: 0.10.0
libtpu: 0.0.40
codegen_flags: <defaults>
</compile_context>

<pallas_src>
import functools

import jax
import jax.numpy as jnp
from jax import lax
from jax.experimental import pallas as pl
from jax.experimental.pallas import tpu as pltpu

_LANE = 128


def _round_up(x, m):
    return (x + m - 1) // m * m


def _pad2(x, rows, cols):
    r, c = x.shape
    if r == rows and c == cols:
        return x
    return jnp.pad(x, ((0, rows - r), (0, cols - c)))


def _pick_tile(total, candidates):
    for t in candidates:
        if total % t == 0:
            return t
    return _LANE


# ---------------------- kernel 1: three fused GNN layers ----------------------
#
# grid = (layer_phase l in {0,1,2}, node_row_tile i)
#   phase 0:  z1_rows = adj_rows @ s0,   s1_rows = act(z1_rows @ W5)   (s0 built at (0,0))
#   phase 1:  z2_rows = adj_rows @ s1,   s2_rows = act(z2_rows @ W6)
#   phase 2:  z_hat_rows = adj_rows @ s2
# Supports s_k live in a persistent (2, n_p, Fp) VMEM scratch (slot = k % 2).

def _igae_gnn_kernel(z_ref, w4_ref, w5_ref, w6_ref, adj_ref, zhat_ref, sup_ref,
                     *, active):
    l = pl.program_id(0)            # layer phase
    i = pl.program_id(1)            # node-row tile
    tm = adj_ref.shape[0]

    def act(x):
        return jnp.tanh(x) if active else x

    # Build the full first support s0 = act(z @ W4) once, into scratch slot 0.
    @pl.when((l == 0) & (i == 0))
    def _():
        s0 = jnp.dot(z_ref[...], w4_ref[...], preferred_element_type=jnp.float32)
        sup_ref[0] = act(s0).astype(sup_ref.dtype)

    # out_rows = adj_rows @ s_l   (s_l is resident in VMEM scratch slot l % 2).
    out_rows = jnp.dot(adj_ref[...], sup_ref[l % 2],
                       preferred_element_type=jnp.float32)          # (tm, Fp) f32

    row0 = pl.multiple_of(i * tm, tm)

    @pl.when(l == 0)        # s1 rows -> slot 1
    def _():
        s1 = jnp.dot(out_rows.astype(w5_ref.dtype), w5_ref[...],
                     preferred_element_type=jnp.float32)
        sup_ref[1, pl.ds(row0, tm), :] = act(s1).astype(sup_ref.dtype)

    @pl.when(l == 1)        # s2 rows -> slot 0 (s0 is no longer needed)
    def _():
        s2 = jnp.dot(out_rows.astype(w6_ref.dtype), w6_ref[...],
                     preferred_element_type=jnp.float32)
        sup_ref[0, pl.ds(row0, tm), :] = act(s2).astype(sup_ref.dtype)

    # Write the current layer's rows every phase (keeps the output buffer fully
    # defined); only the last phase's (l == 2) values survive in HBM.
    zhat_ref[...] = out_rows


# ---------------------- kernel 2: sigmoid(z_hat @ z_hat.T) --------------------

def _zadj_kernel(zr_ref, zc_ref, out_ref):
    logits = lax.dot_general(zr_ref[...], zc_ref[...],
                             dimension_numbers=(((1,), (1,)), ((), ())),
                             preferred_element_type=jnp.float32)
    # sigmoid(x) == 0.5 * tanh(0.5 * x) + 0.5  -> single EUP transcendental.
    out_ref[...] = (0.5 * jnp.tanh(0.5 * logits) + 0.5).astype(out_ref.dtype)


# ------------------------------- JAX wrapper ----------------------------------

def igae_decoder_forward(params, z_igae, adj, name="acm",
                         compute_dtype=jnp.bfloat16, adj_out_dtype=jnp.float32):
    # matches: active = False if name == 'hhar' else True
    active = name != "hhar"

    n, f_in = z_igae.shape
    f1 = params["w4"].shape[1]
    f2 = params["w5"].shape[1]
    f3 = params["w6"].shape[1]

    cdt = compute_dtype
    n_p = _round_up(n, _LANE)
    fp = _round_up(max(f_in, f1, f2, f3), _LANE)   # one common padded feature width

    # bf16 cast fused with the pad at the HBM boundary (half the adj DMA bytes).
    # Zero padding is exact: padded weight rows/cols and adj rows/cols contribute
    # exactly zero (tanh(0)=0), so the valid [:n, :f] region is the same math.
    z_p = _pad2(z_igae.astype(cdt), n_p, fp)
    w4_p = _pad2(params["w4"].astype(cdt), fp, fp)
    w5_p = _pad2(params["w5"].astype(cdt), fp, fp)
    w6_p = _pad2(params["w6"].astype(cdt), fp, fp)
    adj_p = _pad2(adj.astype(cdt), n_p, n_p)

    # ---- kernel 1: fused GNN layers, adj streamed in row tiles ----
    tm = _pick_tile(n_p, (256, 128))
    n_tiles = n_p // tm

    vmem_a = (2 * tm * n_p * 2          # adj row tile, double-buffered
              + 2 * n_p * fp * 2        # z (fetched once; x2 for safety)
              + 2 * 3 * fp * fp * 2     # weights
              + 2 * tm * fp * 4         # z_hat output tile, double-buffered
              + 2 * n_p * fp * 2        # persistent support scratch (2 slots)
              + n_p * fp * 6)           # transient s0 = act(z @ W4) intermediate
    vmem_a = int(min(max(vmem_a + (4 << 20), 16 << 20), 56 << 20))   # v7x-safe clamp

    cost_a = pl.CostEstimate(
        flops=int(2 * 3 * n_p * n_p * fp + 2 * 3 * n_p * fp * fp),
        transcendentals=int(3 * n_p * fp) if active else 0,
        bytes_accessed=int(3 * n_p * n_p * 2 + n_p * fp * 2
                           + 3 * fp * fp * 2 + 3 * n_p * fp * 4),
    )

    z_hat_p = pl.pallas_call(
        functools.partial(_igae_gnn_kernel, active=active),
        out_shape=jax.ShapeDtypeStruct((n_p, fp), jnp.float32),
        grid_spec=pltpu.PrefetchScalarGridSpec(
            num_scalar_prefetch=0,
            grid=(3, n_tiles),
            in_specs=[
                pl.BlockSpec((n_p, fp), lambda l, i: (0, 0)),   # z (fetched once)
                pl.BlockSpec((fp, fp), lambda l, i: (0, 0)),    # w4
                pl.BlockSpec((fp, fp), lambda l, i: (0, 0)),    # w5
                pl.BlockSpec((fp, fp), lambda l, i: (0, 0)),    # w6
                pl.BlockSpec((tm, n_p), lambda l, i: (i, 0)),   # adj row tile (streamed)
            ],
            out_specs=pl.BlockSpec((tm, fp), lambda l, i: (i, 0)),
            scratch_shapes=[pltpu.VMEM((2, n_p, fp), cdt)],
        ),
        compiler_params=pltpu.CompilerParams(
            # Phases and row tiles carry cross-iteration scratch state -> sequential.
            dimension_semantics=("arbitrary", "arbitrary"),
            vmem_limit_bytes=vmem_a),
        cost_estimate=cost_a,
    )(z_p, w4_p, w5_p, w6_p, adj_p)

    # ---- kernel 2: z_hat_adj = sigmoid(z_hat @ z_hat.T), (row, col) tiled ----
    z_hat_c = z_hat_p.astype(cdt)             # tiny (n_p x fp) cast outside the kernel
    tr = _pick_tile(n_p, (256, 128))
    tc = _pick_tile(n_p, (512, 256, 128))     # >=256-wide output cols for v6e/v7x MXU

    out_isz = jnp.dtype(adj_out_dtype).itemsize
    vmem_b = 2 * (tr * fp * 2 + tc * fp * 2 + tr * tc * out_isz)
    vmem_b = int(min(max(vmem_b + (4 << 20), 16 << 20), 56 << 20))

    cost_b = pl.CostEstimate(
        flops=int(2 * n_p * n_p * fp),
        transcendentals=int(n_p * n_p),
        bytes_accessed=int(n_p * n_p * out_isz + 2 * n_p * fp * 2),
    )

    z_adj_p = pl.pallas_call(
        _zadj_kernel,
        out_shape=jax.ShapeDtypeStruct((n_p, n_p), adj_out_dtype),
        grid_spec=pltpu.PrefetchScalarGridSpec(
            num_scalar_prefetch=0,
            grid=(n_p // tr, n_p // tc),
            in_specs=[
                pl.BlockSpec((tr, fp), lambda i, j: (i, 0)),    # z_hat row tile
                pl.BlockSpec((tc, fp), lambda i, j: (j, 0)),    # z_hat "col" tile
            ],
            out_specs=pl.BlockSpec((tr, tc), lambda i, j: (i, j)),
        ),
        compiler_params=pltpu.CompilerParams(
            dimension_semantics=("parallel", "parallel"),       # independent output tiles
            vmem_limit_bytes=vmem_b),
        cost_estimate=cost_b,
    )(z_hat_c, z_hat_c)

    # Slice the zero padding away (cheap XLA slices outside the kernels).
    return z_hat_p[:n, :f3], z_adj_p[:n, :n]


# ------------------------------- init helpers ----------------------------------

def xavier_uniform(key, fan_in, fan_out, dtype=jnp.float32):
    # torch.nn.init.xavier_uniform_ : U(-a, a), a = sqrt(6 / (fan_in + fan_out))
    a = (6.0 / (fan_in + fan_out)) ** 0.5
    return jax.random.uniform(key, (fan_in, fan_out), dtype=dtype, minval=-a, maxval=a)


def init_igae_decoder_params(key, gae_n_dec_1, gae_n_dec_2, gae_n_dec_3, n_input):
    k4, k5, k6 = jax.random.split(key, 3)
    return {
        "w4": xavier_uniform(k4, gae_n_dec_1, gae_n_dec_2),
        "w5": xavier_uniform(k5, gae_n_dec_2, gae_n_dec_3),
        "w6": xavier_uniform(k6, gae_n_dec_3, n_input),
    }


# ----------------------------------- main ---------------------------------------

if __name__ == "__main__":
    n_nodes = 64
    gae_n_dec_1, gae_n_dec_2, gae_n_dec_3, n_input = 16, 32, 64, 128

    key = jax.random.PRNGKey(0)
    k_params, k_z, k_adj = jax.random.split(key, 3)

    params = init_igae_decoder_params(
        k_params, gae_n_dec_1, gae_n_dec_2, gae_n_dec_3, n_input
    )

    z_igae = jax.random.normal(k_z, (n_nodes, gae_n_dec_1), dtype=jnp.float32)
    # Symmetric, row-normalized dense adjacency (synthetic).
    a = jax.random.uniform(k_adj, (n_nodes, n_nodes), dtype=jnp.float32)
    adj = (a + a.T) * 0.5
    adj = adj / jnp.sum(adj, axis=1, keepdims=True)

    fwd = jax.jit(functools.partial(igae_decoder_forward, name="acm"))
    z_hat, z_hat_adj = fwd(params, z_igae, adj)
    jax.block_until_ready((z_hat, z_hat_adj))

    # Pure-JAX f32 reference (same math, outside Pallas).
    def ref_layer(x, w, adj_):
        return adj_ @ jnp.tanh(x @ w)

    z_ref = ref_layer(z_igae, params["w4"], adj)
    z_ref = ref_layer(z_ref, params["w5"], adj)
    z_hat_ref = ref_layer(z_ref, params["w6"], adj)
    z_hat_adj_ref = jax.nn.sigmoid(z_hat_ref @ z_hat_ref.T)

    assert z_hat.shape == (n_nodes, n_input)
    assert z_hat_adj.shape == (n_nodes, n_nodes)
    # bf16 MXU operands (f32 accumulation) -> loosened tolerance vs f32 reference.
    assert jnp.allclose(z_hat, z_hat_ref, atol=3e-2, rtol=3e-2)
    assert jnp.allclose(z_hat_adj, z_hat_adj_ref, atol=3e-2, rtol=3e-2)

    print("KERNEL_OK")
</pallas_src>

<mosaic_0001>
module attributes {stable_mosaic.version = 11 : i64} {
  func.func @_igae_gnn_kernel(%arg0: i32, %arg1: i32, %arg2: memref<128x128xbf16, #tpu.memory_space<vmem>>, %arg3: memref<128x128xbf16, #tpu.memory_space<vmem>>, %arg4: memref<128x128xbf16, #tpu.memory_space<vmem>>, %arg5: memref<128x128xbf16, #tpu.memory_space<vmem>>, %arg6: memref<128x128xbf16, #tpu.memory_space<vmem>>, %arg7: memref<128x128xf32, #tpu.memory_space<vmem>>, %arg8: memref<2x128x128xbf16, #tpu.memory_space<vmem>>) attributes {dimension_semantics = [#tpu.dimension_semantics<arbitrary>, #tpu.dimension_semantics<arbitrary>], iteration_bounds = array<i64: 3, 1>, scalar_prefetch = 0 : i64, scratch_operands = 1 : i64, tpu.core_type = #tpu.core_type<tc>, window_params = [{pipeline_mode = #tpu.pipeline_mode<synchronous>, transform_indices = @transform_0, window_bounds = array<i64: 128, 128>}, {pipeline_mode = #tpu.pipeline_mode<synchronous>, transform_indices = @transform_1, window_bounds = array<i64: 128, 128>}, {pipeline_mode = #tpu.pipeline_mode<synchronous>, transform_indices = @transform_2, window_bounds = array<i64: 128, 128>}, {pipeline_mode = #tpu.pipeline_mode<synchronous>, transform_indices = @transform_3, window_bounds = array<i64: 128, 128>}, {transform_indices = @transform_4, window_bounds = array<i64: 128, 128>}, {transform_indices = @transform_5, window_bounds = array<i64: 128, 128>}]} {
    %c0_i32 = arith.constant 0 : i32
    %0 = arith.cmpi eq, %arg0, %c0_i32 : i32
    %c0_i32_0 = arith.constant 0 : i32
    %1 = arith.cmpi eq, %arg1, %c0_i32_0 : i32
    %2 = arith.andi %0, %1 : i1
    %3 = arith.extui %2 : i1 to i32
    %c0_i32_1 = arith.constant 0 : i32
    %4 = arith.cmpi ne, %3, %c0_i32_1 : i32
    scf.if %4 {
      %c0_15 = arith.constant 0 : index
      %c0_16 = arith.constant 0 : index
      %29 = vector.load %arg2[%c0_15, %c0_16] : memref<128x128xbf16, #tpu.memory_space<vmem>>, vector<128x128xbf16>
      %c0_17 = arith.constant 0 : index
      %c0_18 = arith.constant 0 : index
      %30 = vector.load %arg3[%c0_17, %c0_18] : memref<128x128xbf16, #tpu.memory_space<vmem>>, vector<128x128xbf16>
      %cst_19 = arith.constant dense<0.000000e+00> : vector<128x128xf32>
      %31 = tpu.matmul %29, %30, %cst_19 {dimension_numbers = #tpu.dot_dimension_numbers<[1], [0], [0], [1], [0, 0, 1, 1], [], []>} : vector<128x128xbf16>, vector<128x128xbf16>, vector<128x128xf32> -> vector<128x128xf32>
      %32 = math.tanh %31 : vector<128x128xf32>
      %33 = arith.truncf %32 : vector<128x128xf32> to vector<128x128xbf16>
      %c0_20 = arith.constant 0 : index
      %c0_21 = arith.constant 0 : index
      %c0_22 = arith.constant 0 : index
      %34 = vector.load %arg8[%c0_20, %c0_21, %c0_22] : memref<2x128x128xbf16, #tpu.memory_space<vmem>>, vector<1x128x128xbf16>
      %35 = vector.shape_cast %34 : vector<1x128x128xbf16> to vector<128x128xbf16>
      %36 = vector.shape_cast %33 : vector<128x128xbf16> to vector<1x128x128xbf16>
      tpu.vector_store %arg8[%c0_20, %c0_21, %c0_22], %36 {strides = array<i32>} : memref<2x128x128xbf16, #tpu.memory_space<vmem>>, vector<1x128x128xbf16>,
    } else {
    }
    %c0 = arith.constant 0 : index
    %c0_2 = arith.constant 0 : index
    %5 = vector.load %arg6[%c0, %c0_2] : memref<128x128xbf16, #tpu.memory_space<vmem>>, vector<128x128xbf16>
    %c2_i32 = arith.constant 2 : i32
    %c0_i32_3 = arith.constant 0 : i32
    %6 = arith.cmpi eq, %c2_i32, %c0_i32_3 : i32
    %c1_i32 = arith.constant 1 : i32
    %7 = arith.select %6, %c1_i32, %c2_i32 : i32
    %8 = arith.remsi %arg0, %7 : i32
    %c0_i32_4 = arith.constant 0 : i32
    %9 = arith.cmpi ne, %8, %c0_i32_4 : i32
    %c0_i32_5 = arith.constant 0 : i32
    %10 = arith.cmpi slt, %8, %c0_i32_5 : i32
    %c0_i32_6 = arith.constant 0 : i32
    %11 = arith.cmpi slt, %7, %c0_i32_6 : i32
    %12 = arith.xori %10, %11 : i1
    %13 = arith.andi %12, %9 : i1
    %14 = arith.addi %8, %7 : i32
    %15 = arith.select %13, %14, %8 : i32
    %16 = arith.index_cast %15 : i32 to index
    %c0_7 = arith.constant 0 : index
    %c0_8 = arith.constant 0 : index
    %17 = vector.load %arg8[%16, %c0_7, %c0_8] : memref<2x128x128xbf16, #tpu.memory_space<vmem>>, vector<1x128x128xbf16>
    %18 = vector.shape_cast %17 : vector<1x128x128xbf16> to vector<128x128xbf16>
    %cst = arith.constant dense<0.000000e+00> : vector<128x128xf32>
    %19 = tpu.matmul %5, %18, %cst {dimension_numbers = #tpu.dot_dimension_numbers<[1], [0], [0], [1], [0, 0, 1, 1], [], []>} : vector<128x128xbf16>, vector<128x128xbf16>, vector<128x128xf32> -> vector<128x128xf32>
    %c128_i32 = arith.constant 128 : i32
    %20 = arith.muli %arg1, %c128_i32 : i32
    %21 = tpu.assume_multiple %20, 128 : i32
    %c0_i32_9 = arith.constant 0 : i32
    %22 = arith.cmpi eq, %arg0, %c0_i32_9 : i32
    %23 = arith.extui %22 : i1 to i32
    %c0_i32_10 = arith.constant 0 : i32
    %24 = arith.cmpi ne, %23, %c0_i32_10 : i32
    scf.if %24 {
      %29 = arith.truncf %19 : vector<128x128xf32> to vector<128x128xbf16>
      %c0_15 = arith.constant 0 : index
      %c0_16 = arith.constant 0 : index
      %30 = vector.load %arg4[%c0_15, %c0_16] : memref<128x128xbf16, #tpu.memory_space<vmem>>, vector<128x128xbf16>
      %cst_17 = arith.constant dense<0.000000e+00> : vector<128x128xf32>
      %31 = tpu.matmul %29, %30, %cst_17 {dimension_numbers = #tpu.dot_dimension_numbers<[1], [0], [0], [1], [0, 0, 1, 1], [], []>} : vector<128x128xbf16>, vector<128x128xbf16>, vector<128x128xf32> -> vector<128x128xf32>
      %32 = math.tanh %31 : vector<128x128xf32>
      %33 = arith.truncf %32 : vector<128x128xf32> to vector<128x128xbf16>
      %c1 = arith.constant 1 : index
      %34 = arith.index_cast %21 : i32 to index
      %c0_18 = arith.constant 0 : index
      %35 = vector.load %arg8[%c1, %34, %c0_18] : memref<2x128x128xbf16, #tpu.memory_space<vmem>>, vector<1x128x128xbf16>
      %36 = vector.shape_cast %35 : vector<1x128x128xbf16> to vector<128x128xbf16>
      %37 = vector.shape_cast %33 : vector<128x128xbf16> to vector<1x128x128xbf16>
      tpu.vector_store %arg8[%c1, %34, %c0_18], %37 {strides = array<i32>} : memref<2x128x128xbf16, #tpu.memory_space<vmem>>, vector<1x128x128xbf16>,
    } else {
    }
    %c1_i32_11 = arith.constant 1 : i32
    %25 = arith.cmpi eq, %arg0, %c1_i32_11 : i32
    %26 = arith.extui %25 : i1 to i32
    %c0_i32_12 = arith.constant 0 : i32
    %27 = arith.cmpi ne, %26, %c0_i32_12 : i32
    scf.if %27 {
      %29 = arith.truncf %19 : vector<128x128xf32> to vector<128x128xbf16>
      %c0_15 = arith.constant 0 : index
      %c0_16 = arith.constant 0 : index
      %30 = vector.load %arg5[%c0_15, %c0_16] : memref<128x128xbf16, #tpu.memory_space<vmem>>, vector<128x128xbf16>
      %cst_17 = arith.constant dense<0.000000e+00> : vector<128x128xf32>
      %31 = tpu.matmul %29, %30, %cst_17 {dimension_numbers = #tpu.dot_dimension_numbers<[1], [0], [0], [1], [0, 0, 1, 1], [], []>} : vector<128x128xbf16>, vector<128x128xbf16>, vector<128x128xf32> -> vector<128x128xf32>
      %32 = math.tanh %31 : vector<128x128xf32>
      %33 = arith.truncf %32 : vector<128x128xf32> to vector<128x128xbf16>
      %c0_18 = arith.constant 0 : index
      %34 = arith.index_cast %21 : i32 to index
      %c0_19 = arith.constant 0 : index
      %35 = vector.load %arg8[%c0_18, %34, %c0_19] : memref<2x128x128xbf16, #tpu.memory_space<vmem>>, vector<1x128x128xbf16>
      %36 = vector.shape_cast %35 : vector<1x128x128xbf16> to vector<128x128xbf16>
      %37 = vector.shape_cast %33 : vector<128x128xbf16> to vector<1x128x128xbf16>
      tpu.vector_store %arg8[%c0_18, %34, %c0_19], %37 {strides = array<i32>} : memref<2x128x128xbf16, #tpu.memory_space<vmem>>, vector<1x128x128xbf16>,
    } else {
    }
    %c0_13 = arith.constant 0 : index
    %c0_14 = arith.constant 0 : index
    %28 = vector.load %arg7[%c0_13, %c0_14] : memref<128x128xf32, #tpu.memory_space<vmem>>, vector<128x128xf32>
    tpu.vector_store %arg7[%c0_13, %c0_14], %19 {strides = array<i32>} : memref<128x128xf32, #tpu.memory_space<vmem>>, vector<128x128xf32>,
    return
  }
  func.func @transform_0(%arg0: i32, %arg1: i32) -> (i32, i32) {
    %c0_i32 = arith.constant 0 : i32
    %c0_i32_0 = arith.constant 0 : i32
    %c0_i32_1 = arith.constant 0 : i32
    return %c0_i32, %c0_i32_0 : i32, i32
  }
  func.func @transform_1(%arg0: i32, %arg1: i32) -> (i32, i32) {
    %c0_i32 = arith.constant 0 : i32
    %c0_i32_0 = arith.constant 0 : i32
    %c0_i32_1 = arith.constant 0 : i32
    return %c0_i32, %c0_i32_0 : i32, i32
  }
  func.func @transform_2(%arg0: i32, %arg1: i32) -> (i32, i32) {
    %c0_i32 = arith.constant 0 : i32
    %c0_i32_0 = arith.constant 0 : i32
    %c0_i32_1 = arith.constant 0 : i32
    return %c0_i32, %c0_i32_0 : i32, i32
  }
  func.func @transform_3(%arg0: i32, %arg1: i32) -> (i32, i32) {
    %c0_i32 = arith.constant 0 : i32
    %c0_i32_0 = arith.constant 0 : i32
    %c0_i32_1 = arith.constant 0 : i32
    return %c0_i32, %c0_i32_0 : i32, i32
  }
  func.func @transform_4(%arg0: i32, %arg1: i32) -> (i32, i32) {
    %c0_i32 = arith.constant 0 : i32
    %c0_i32_0 = arith.constant 0 : i32
    return %arg1, %c0_i32 : i32, i32
  }
  func.func @transform_5(%arg0: i32, %arg1: i32) -> (i32, i32) {
    %c0_i32 = arith.constant 0 : i32
    %c0_i32_0 = arith.constant 0 : i32
    return %arg1, %c0_i32 : i32, i32
  }
}

module attributes {stable_mosaic.version = 11 : i64} {
  func.func @_zadj_kernel(%arg0: i32, %arg1: i32, %arg2: memref<128x128xbf16, #tpu.memory_space<vmem>>, %arg3: memref<128x128xbf16, #tpu.memory_space<vmem>>, %arg4: memref<128x128xf32, #tpu.memory_space<vmem>>) attributes {dimension_semantics = [#tpu.dimension_semantics<parallel>, #tpu.dimension_semantics<parallel>], iteration_bounds = array<i64: 1, 1>, scalar_prefetch = 0 : i64, scratch_operands = 0 : i64, tpu.core_type = #tpu.core_type<tc>, window_params = [{transform_indices = @transform_0, window_bounds = array<i64: 128, 128>}, {transform_indices = @transform_1, window_bounds = array<i64: 128, 128>}, {transform_indices = @transform_2, window_bounds = array<i64: 128, 128>}]} {
    %c0 = arith.constant 0 : index
    %c0_0 = arith.constant 0 : index
    %0 = vector.load %arg2[%c0, %c0_0] : memref<128x128xbf16, #tpu.memory_space<vmem>>, vector<128x128xbf16>
    %c0_1 = arith.constant 0 : index
    %c0_2 = arith.constant 0 : index
    %1 = vector.load %arg3[%c0_1, %c0_2] : memref<128x128xbf16, #tpu.memory_space<vmem>>, vector<128x128xbf16>
    %cst = arith.constant dense<0.000000e+00> : vector<128x128xf32>
    %2 = tpu.matmul %0, %1, %cst {dimension_numbers = #tpu.dot_dimension_numbers<[1], [1], [0], [0], [0, 0, 1, 0], [], []>} : vector<128x128xbf16>, vector<128x128xbf16>, vector<128x128xf32> -> vector<128x128xf32>
    %cst_3 = arith.constant 5.000000e-01 : f32
    %3 = vector.broadcast %cst_3 : f32 to vector<128x128xf32>
    %4 = arith.mulf %3, %2 : vector<128x128xf32>
    %5 = math.tanh %4 : vector<128x128xf32>
    %cst_4 = arith.constant 5.000000e-01 : f32
    %6 = vector.broadcast %cst_4 : f32 to vector<128x128xf32>
    %7 = arith.mulf %6, %5 : vector<128x128xf32>
    %cst_5 = arith.constant 5.000000e-01 : f32
    %8 = vector.broadcast %cst_5 : f32 to vector<128x128xf32>
    %9 = arith.addf %7, %8 : vector<128x128xf32>
    %c0_6 = arith.constant 0 : index
    %c0_7 = arith.constant 0 : index
    %10 = vector.load %arg4[%c0_6, %c0_7] : memref<128x128xf32, #tpu.memory_space<vmem>>, vector<128x128xf32>
    tpu.vector_store %arg4[%c0_6, %c0_7], %9 {strides = array<i32>} : memref<128x128xf32, #tpu.memory_space<vmem>>, vector<128x128xf32>,
    return
  }
  func.func @transform_0(%arg0: i32, %arg1: i32) -> (i32, i32) {
    %c0_i32 = arith.constant 0 : i32
    %c0_i32_0 = arith.constant 0 : i32
    return %arg0, %c0_i32 : i32, i32
  }
  func.func @transform_1(%arg0: i32, %arg1: i32) -> (i32, i32) {
    %c0_i32 = arith.constant 0 : i32
    %c0_i32_0 = arith.constant 0 : i32
    return %arg1, %c0_i32 : i32, i32
  }
  func.func @transform_2(%arg0: i32, %arg1: i32) -> (i32, i32) {
    %c0_i32 = arith.constant 0 : i32
    return %arg0, %arg1 : i32, i32
  }
}

</mosaic_0001>

<bundles_post_ra>
// kernel: igae_decoder_forward.3
= control target key start
LH: loop header
LB: loop body
LE: loop exit
PB: predicated region body
PF: predicated region fallthrough
CT: control target
= control target key end

     0   :  { %s519_s1 = inlined_call_operand.vmem [shape: bf16[128,128], index: 1, kind: input, shape index: {}, may-alias: {0,1}]   ;;  %s520_s0 = inlined_call_operand.vmem [shape: bf16[128,128], index: 0, kind: input, shape index: {}, may-alias: {0,1}]   ;;  %s521_s2 = inlined_call_operand.vmem [shape: f32[128,128], index: 2, kind: output, shape index: {}]  }
   0x1   :  { %v351_v0 = vld [vmem:[%s519_s1 + $0x38] sm:$0xff]  ;;  %v350_v1 = vld [vmem:[%s519_s1 + $0x30] sm:$0xff]  ;;  %v349_v2 = vld [vmem:[%s519_s1 + $0x28] sm:$0xff] }
   0x2   :  { %139 = vmatpush.bf16.xpose.msra.mxu0 %v351_v0  ;;  %352 = vmatpush.bf16.xpose.msra.mxu1 %v351_v0  ;;  %v348_v3 = vld [vmem:[%s519_s1 + $0x20] sm:$0xff]  ;;  %v347_v4 = vld [vmem:[%s519_s1 + $0x18] sm:$0xff]  ;;  %v346_v5 = vld [vmem:[%s519_s1 + $0x10] sm:$0xff] }
   0x3   :  { %353 = vmatpush.bf16.xpose.msra.mxu2 %v351_v0  ;;  %354 = vmatpush.bf16.xpose.msra.mxu3 %v351_v0  ;;  %v345_v6 = vld [vmem:[%s519_s1 + $0x8] sm:$0xff]  ;;  %v344_v7 = vld [vmem:[%s519_s1] sm:$0xff]  ;;  %v338_v9 = vld [vmem:[%s520_s0 + $0x10] sm:$0xff] }
   0x4   :  { %v336_v8 = vld [vmem:[%s520_s0] sm:$0xff]  ;;  %v342_v11 = vld [vmem:[%s520_s0 + $0x30] sm:$0xff]  ;;  %v337_v12 = vld [vmem:[%s520_s0 + $0x8] sm:$0xff] }
   0x5   :  { %v340_v10 = vld [vmem:[%s520_s0 + $0x20] sm:$0xff]  ;;  %v339_v13 = vld [vmem:[%s520_s0 + $0x18] sm:$0xff]  ;;  %v341_v14 = vld [vmem:[%s520_s0 + $0x28] sm:$0xff] }
   0x6   :  { %v343_v15 = vld [vmem:[%s520_s0 + $0x38] sm:$0xff] }
   0xa   :  { %140 = vmatpush.bf16.xpose.msra.mxu0 %v350_v1  ;;  %355 = vmatpush.bf16.xpose.msra.mxu1 %v350_v1 }
   0xb   :  { %356 = vmatpush.bf16.xpose.msra.mxu2 %v350_v1  ;;  %357 = vmatpush.bf16.xpose.msra.mxu3 %v350_v1 }
  0x12   :  { %141 = vmatpush.bf16.xpose.msra.mxu0 %v349_v2  ;;  %358 = vmatpush.bf16.xpose.msra.mxu1 %v349_v2 }
  0x13   :  { %359 = vmatpush.bf16.xpose.msra.mxu2 %v349_v2  ;;  %360 = vmatpush.bf16.xpose.msra.mxu3 %v349_v2 }
  0x1a   :  { %142 = vmatpush.bf16.xpose.msra.mxu0 %v348_v3  ;;  %361 = vmatpush.bf16.xpose.msra.mxu1 %v348_v3 }
  0x1b   :  { %362 = vmatpush.bf16.xpose.msra.mxu2 %v348_v3  ;;  %363 = vmatpush.bf16.xpose.msra.mxu3 %v348_v3 }
  0x22   :  { %143 = vmatpush.bf16.xpose.msra.mxu0 %v347_v4  ;;  %364 = vmatpush.bf16.xpose.msra.mxu1 %v347_v4 }
  0x23   :  { %365 = vmatpush.bf16.xpose.msra.mxu2 %v347_v4  ;;  %366 = vmatpush.bf16.xpose.msra.mxu3 %v347_v4 }
  0x2a   :  { %144 = vmatpush.bf16.xpose.msra.mxu0 %v346_v5  ;;  %367 = vmatpush.bf16.xpose.msra.mxu1 %v346_v5 }
  0x2b   :  { %368 = vmatpush.bf16.xpose.msra.mxu2 %v346_v5  ;;  %369 = vmatpush.bf16.xpose.msra.mxu3 %v346_v5 }
  0x32   :  { %145 = vmatpush.bf16.xpose.msra.mxu0 %v345_v6  ;;  %370 = vmatpush.bf16.xpose.msra.mxu1 %v345_v6 }
  0x33   :  { %371 = vmatpush.bf16.xpose.msra.mxu2 %v345_v6  ;;  %372 = vmatpush.bf16.xpose.msra.mxu3 %v345_v6 }
  0x3a   :  { %146 = vmatpush.bf16.xpose.msra.mxu0 %v344_v7  ;;  %373 = vmatpush.bf16.xpose.msra.mxu1 %v344_v7 }
  0x3b   :  { %374 = vmatpush.bf16.xpose.msra.mxu2 %v344_v7  ;;  %375 = vmatpush.bf16.xpose.msra.mxu3 %v344_v7 }
  0x41   :  { %147 = vmatmul.bf16.vlgmr.msra.gmra.mxu0 %v336_v8  ;;  %157 = vmatmul.bf16.vlgmr.msra.gmra.mxu1 %v338_v9 }
  0x42   :  { %167 = vmatmul.bf16.vlgmr.msra.gmra.mxu2 %v340_v10  ;;  %177 = vmatmul.bf16.vlgmr.msra.gmra.mxu3 %v342_v11 }
  0x51   :  { %152 = vmatmul.bf16.gmra.mxu0 %v337_v12  ;;  %162 = vmatmul.bf16.gmra.mxu1 %v339_v13 }
  0x52   :  { %172 = vmatmul.bf16.gmra.mxu2 %v341_v14  ;;  %182 = vmatmul.bf16.gmra.mxu3 %v343_v15 }
  0xbe   :  { %v148_v16 = vpop.f32.mrf.mxu0  ;;  %v158_v17 = vpop.f32.mrf.mxu1 }
  0xbf   :  { %v188_v18 = vmul.f32 0.5, %v148_v16  ;;  %v192_v19 = vmul.f32 0.5, %v158_v17 }
  0xc1   :  { %376 = vtanh.f32 %v188_v18 }
  0xc2   :  { %378 = vtanh.f32 %v192_v19 }
  0xc5   :  { %v168_v20 = vpop.f32.mrf.mxu2  ;;  %v178_v21 = vpop.f32.mrf.mxu3 }
  0xc6   :  { %v196_v22 = vmul.f32 0.5, %v168_v20  ;;  %v200_v23 = vmul.f32 0.5, %v178_v21  ;;  %v150_v24 = vpop.f32.mrf.mxu0  ;;  %v160_v25 = vpop.f32.mrf.mxu1 }
  0xc7   :  { %v377_v26 = vpop.eup %376  ;;  %v189_v27 = vmul.f32 0.5, %v150_v24  ;;  %v193_v28 = vmul.f32 0.5, %v160_v25 }
  0xc8   :  { %v379_v29 = vpop.eup %378  ;;  %v220_v30 = vmul.f32 0.5, %v377_v26  ;;  %380 = vtanh.f32 %v196_v22 }
  0xc9   :  { %v224_v31 = vmul.f32 0.5, %v379_v29  ;;  %382 = vtanh.f32 %v200_v23 }
  0xca   :  { %v236_v32 = vadd.f32 0.5, %v220_v30  ;;  %384 = vtanh.f32 %v189_v27 }
  0xcb   :  { %v240_v33 = vadd.f32 0.5, %v224_v31  ;;  %386 = vtanh.f32 %v193_v28 }
  0xcc   :  { %252 = vst [vmem:[%s521_s2] sm:$0xff] %v236_v32 }
  0xcd   :  { %256 = vst [vmem:[%s521_s2 + $0x20] sm:$0xff] %v240_v33  ;;  %v170_v34 = vpop.f32.mrf.mxu2  ;;  %v180_v35 = vpop.f32.mrf.mxu3 }
  0xce   :  { %v381_v36 = vpop.eup %380  ;;  %v197_v37 = vmul.f32 0.5, %v170_v34  ;;  %v201_v38 = vmul.f32 0.5, %v180_v35  ;;  %v153_v39 = vpop.f32.mrf.mxu0 }
  0xcf   :  { %v163_v40 = vpop.f32.mrf.mxu1  ;;  %v383_v41 = vpop.eup %382  ;;  %v228_v42 = vmul.f32 0.5, %v381_v36  ;;  %v190_v43 = vmul.f32 0.5, %v153_v39 }
  0xd0   :  { %v194_v44 = vmul.f32 0.5, %v163_v40  ;;  %v385_v45 = vpop.eup %384  ;;  %v232_v46 = vmul.f32 0.5, %v383_v41  ;;  %388 = vtanh.f32 %v197_v37 }
  0xd1   :  { %v387_v47 = vpop.eup %386  ;;  %v244_v48 = vadd.f32 0.5, %v228_v42  ;;  %v221_v49 = vmul.f32 0.5, %v385_v45  ;;  %390 = vtanh.f32 %v201_v38 }
  0xd2   :  { %v248_v50 = vadd.f32 0.5, %v232_v46  ;;  %v225_v51 = vmul.f32 0.5, %v387_v47  ;;  %392 = vtanh.f32 %v190_v43 }
  0xd3   :  { %260 = vst [vmem:[%s521_s2 + $0x40] sm:$0xff] %v244_v48  ;;  %v237_v52 = vadd.f32 0.5, %v221_v49  ;;  %394 = vtanh.f32 %v194_v44 }
  0xd4   :  { %264 = vst [vmem:[%s521_s2 + $0x60] sm:$0xff] %v248_v50  ;;  %v241_v53 = vadd.f32 0.5, %v225_v51 }
  0xd5   :  { %253 = vst [vmem:[%s521_s2 + $0x8] sm:$0xff] %v237_v52  ;;  %v173_v54 = vpop.f32.mrf.mxu2  ;;  %v183_v55 = vpop.f32.mrf.mxu3 }
  0xd6   :  { %v389_v56 = vpop.eup %388  ;;  %257 = vst [vmem:[%s521_s2 + $0x28] sm:$0xff] %v241_v53  ;;  %v198_v57 = vmul.f32 0.5, %v173_v54  ;;  %v202_v58 = vmul.f32 0.5, %v183_v55  ;;  %v155_v59 = vpop.f32.mrf.mxu0 }
  0xd7   :  { %v165_v60 = vpop.f32.mrf.mxu1  ;;  %v391_v61 = vpop.eup %390  ;;  %v229_v62 = vmul.f32 0.5, %v389_v56  ;;  %v191_v63 = vmul.f32 0.5, %v155_v59 }
  0xd8   :  { %v195_v0 = vmul.f32 0.5, %v165_v60  ;;  %v393_v1 = vpop.eup %392  ;;  %v233_v2 = vmul.f32 0.5, %v391_v61  ;;  %396 = vtanh.f32 %v198_v57 }
  0xd9   :  { %v395_v3 = vpop.eup %394  ;;  %v245_v4 = vadd.f32 0.5, %v229_v62  ;;  %v222_v5 = vmul.f32 0.5, %v393_v1  ;;  %398 = vtanh.f32 %v202_v58 }
  0xda   :  { %v249_v6 = vadd.f32 0.5, %v233_v2  ;;  %v226_v7 = vmul.f32 0.5, %v395_v3  ;;  %400 = vtanh.f32 %v191_v63 }
  0xdb   :  { %261 = vst [vmem:[%s521_s2 + $0x48] sm:$0xff] %v245_v4  ;;  %v238_v8 = vadd.f32 0.5, %v222_v5  ;;  %402 = vtanh.f32 %v195_v0 }
  0xdc   :  { %265 = vst [vmem:[%s521_s2 + $0x68] sm:$0xff] %v249_v6  ;;  %v242_v9 = vadd.f32 0.5, %v226_v7 }
  0xdd   :  { %254 = vst [vmem:[%s521_s2 + $0x10] sm:$0xff] %v238_v8  ;;  %v175_v10 = vpop.f32.mrf.mxu2  ;;  %v185_v11 = vpop.f32.mrf.mxu3 }
  0xde   :  { %v397_v12 = vpop.eup %396  ;;  %258 = vst [vmem:[%s521_s2 + $0x30] sm:$0xff] %v242_v9  ;;  %v199_v13 = vmul.f32 0.5, %v175_v10  ;;  %v203_v14 = vmul.f32 0.5, %v185_v11 }
  0xdf   :  { %v399_v15 = vpop.eup %398  ;;  %v230_v16 = vmul.f32 0.5, %v397_v12 }
  0xe0   :  { %v401_v17 = vpop.eup %400  ;;  %v234_v18 = vmul.f32 0.5, %v399_v15  ;;  %404 = vtanh.f32 %v199_v13 }
  0xe1   :  { %v403_v19 = vpop.eup %402  ;;  %v246_v20 = vadd.f32 0.5, %v230_v16  ;;  %v223_v21 = vmul.f32 0.5, %v401_v17  ;;  %406 = vtanh.f32 %v203_v14 }
  0xe2   :  { %v250_v22 = vadd.f32 0.5, %v234_v18  ;;  %v227_v23 = vmul.f32 0.5, %v403_v19 }
  0xe3   :  { %262 = vst [vmem:[%s521_s2 + $0x50] sm:$0xff] %v246_v20  ;;  %v239_v24 = vadd.f32 0.5, %v223_v21 }
  0xe4   :  { %266 = vst [vmem:[%s521_s2 + $0x70] sm:$0xff] %v250_v22  ;;  %v243_v25 = vadd.f32 0.5, %v227_v23 }
  0xe5   :  { %255 = vst [vmem:[%s521_s2 + $0x18] sm:$0xff] %v239_v24 }
  0xe6   :  { %v405_v26 = vpop.eup %404  ;;  %259 = vst [vmem:[%s521_s2 + $0x38] sm:$0xff] %v243_v25 }
  0xe7   :  { %v407_v27 = vpop.eup %406  ;;  %v231_v28 = vmul.f32 0.5, %v405_v26 }
  0xe8   :  { %v235_v29 = vmul.f32 0.5, %v407_v27 }
  0xe9   :  { %v247_v30 = vadd.f32 0.5, %v231_v28 }
  0xea   :  { %v251_v31 = vadd.f32 0.5, %v235_v29 }
  0xeb   :  { %263 = vst [vmem:[%s521_s2 + $0x58] sm:$0xff] %v247_v30 }
  0xec   :  { %267 = vst [vmem:[%s521_s2 + $0x78] sm:$0xff] %v251_v31 }

// kernel: igae_decoder_forward.2
= control target key start
LH: loop header
LB: loop body
LE: loop exit
PB: predicated region body
PF: predicated region fallthrough
CT: control target
= control target key end

     0   :  { %s1792_s18 = smov 0   ;;  %s1794_s19 = smov 0   ;;  %s2085_s0 = inlined_call_operand.vmem [shape: bf16[128,128], index: 0, kind: input, shape index: {}]   ;;  %s2086_s1 = inlined_call_operand.vmem [shape: bf16[128,128], index: 1, kind: input, shape index: {}]   ;;  %s2087_s2 = inlined_call_operand.vmem [shape: bf16[128,128], index: 2, kind: input, shape index: {}]   ;;  %s2088_s3 = inlined_call_operand.vmem [shape: bf16[128,128], index: 3, kind: input, shape index: {}]   ;;  %s2089_s4 = inlined_call_operand.vmem [shape: bf16[128,128], index: 4, kind: input, shape index: {}]   ;;  %s2090_s5 = inlined_call_operand.vmem [shape: f32[128,128], index: 5, kind: output, shape index: {}]  }
   0x1   :  { %s1796_s20 = smov 0  }
   0x2 LB: > { %s27_s21 = sadd.s32 1, %s1756_s19  ;;  %p1109_p0 = scmp.ge.s32.totalorder %s1760_s20, 1  ;;  %s1760_s20 = sphi %s1796_s20, %s15_s20   ;;  %s1756_s19 = sphi %s1794_s19, %s2092_s19   ;;  %s1752_s18 = sphi %s1792_s18, %s2091_s18  }
   0x3   : > { %p29_p1 = scmp.ge.s32.totalorder %s27_s21, 3  ;;  %p200_p2 = scmp.lt.s32.totalorder %s1760_s20, 4 }
   0x5   : > { %s2094_s21 = smov (%p29_p1, %s27_s21), 0  ;;  %p201_p3 = pnand %p1109_p0, %p200_p2 }
   0x6   : > { %p240_p4 = scmp.eq.s32.totalorder (!%p201_p3), %s1752_s18, 0 }
   0x7   : > { %204 = sbr.rel (%p201_p3) target bundleno = 834 (0x342), region = 40 }
   0xc   : > { %245 = sbr.rel (!%p240_p4) target bundleno = 212 (0xd4), region = 44  ;;  %v1346_v0 = vld [vmem:[%s2086_s1 + $0x38] sm:$0xff] (%p240_p4)  ;;  %v1345_v1 = vld [vmem:[%s2086_s1 + $0x30] sm:$0xff] (%p240_p4)  ;;  %v1344_v2 = vld [vmem:[%s2086_s1 + $0x28] sm:$0xff] (%p240_p4) }
   0xd   : > { %374 = vmatpush.bf16.msra.mxu0 (%p240_p4), %v1346_v0  ;;  %1522 = vmatpush.bf16.msra.mxu1 (%p240_p4), %v1346_v0  ;;  %v1343_v3 = vld [vmem:[%s2086_s1 + $0x20] sm:$0xff] (%p240_p4)  ;;  %v1342_v4 = vld [vmem:[%s2086_s1 + $0x18] sm:$0xff] (%p240_p4)  ;;  %v1341_v5 = vld [vmem:[%s2086_s1 + $0x10] sm:$0xff] (%p240_p4) }
   0xe   : > { %1523 = vmatpush.bf16.msra.mxu2 (%p240_p4), %v1346_v0  ;;  %1524 = vmatpush.bf16.msra.mxu3 (%p240_p4), %v1346_v0  ;;  %v1340_v6 = vld [vmem:[%s2086_s1 + $0x8] sm:$0xff] (%p240_p4)  ;;  %v1339_v7 = vld [vmem:[%s2086_s1] sm:$0xff] (%p240_p4)  ;;  %v1333_v9 = vld [vmem:[%s2085_s0 + $0x10] sm:$0xff] (%p240_p4) }
   0xf   : > { %v1331_v8 = vld [vmem:[%s2085_s0] sm:$0xff] (%p240_p4)  ;;  %v1337_v11 = vld [vmem:[%s2085_s0 + $0x30] sm:$0xff] (%p240_p4)  ;;  %v1332_v12 = vld [vmem:[%s2085_s0 + $0x8] sm:$0xff] (%p240_p4) }
  0x10   : > { %v1335_v10 = vld [vmem:[%s2085_s0 + $0x20] sm:$0xff] (%p240_p4)  ;;  %v1334_v13 = vld [vmem:[%s2085_s0 + $0x18] sm:$0xff] (%p240_p4)  ;;  %v1336_v14 = vld [vmem:[%s2085_s0 + $0x28] sm:$0xff] (%p240_p4) }
  0x11   : > { %375 = vmatpush.bf16.msra.mxu0 %v1345_v1  ;;  %1525 = vmatpush.bf16.msra.mxu1 %v1345_v1  ;;  %v1338_v15 = vld [vmem:[%s2085_s0 + $0x38] sm:$0xff] }
  0x12   : > { %1526 = vmatpush.bf16.msra.mxu2 %v1345_v1  ;;  %1527 = vmatpush.bf16.msra.mxu3 %v1345_v1 }
  0x15   : > { %376 = vmatpush.bf16.msra.mxu0 %v1344_v2  ;;  %1528 = vmatpush.bf16.msra.mxu1 %v1344_v2 }
  0x16   : > { %1529 = vmatpush.bf16.msra.mxu2 %v1344_v2  ;;  %1530 = vmatpush.bf16.msra.mxu3 %v1344_v2 }
  0x19   : > { %377 = vmatpush.bf16.msra.mxu0 %v1343_v3  ;;  %1531 = vmatpush.bf16.msra.mxu1 %v1343_v3 }
  0x1a   : > { %1532 = vmatpush.bf16.msra.mxu2 %v1343_v3  ;;  %1533 = vmatpush.bf16.msra.mxu3 %v1343_v3 }
  0x1d   : > { %378 = vmatpush.bf16.msra.mxu0 %v1342_v4  ;;  %1534 = vmatpush.bf16.msra.mxu1 %v1342_v4 }
  0x1e   : > { %1535 = vmatpush.bf16.msra.mxu2 %v1342_v4  ;;  %1536 = vmatpush.bf16.msra.mxu3 %v1342_v4 }
  0x21   : > { %379 = vmatpush.bf16.msra.mxu0 %v1341_v5  ;;  %1537 = vmatpush.bf16.msra.mxu1 %v1341_v5 }
  0x22   : > { %1538 = vmatpush.bf16.msra.mxu2 %v1341_v5  ;;  %1539 = vmatpush.bf16.msra.mxu3 %v1341_v5 }
  0x25   : > { %380 = vmatpush.bf16.msra.mxu0 %v1340_v6  ;;  %1540 = vmatpush.bf16.msra.mxu1 %v1340_v6 }
  0x26   : > { %1541 = vmatpush.bf16.msra.mxu2 %v1340_v6  ;;  %1542 = vmatpush.bf16.msra.mxu3 %v1340_v6 }
  0x29   : > { %381 = vmatpush.bf16.msra.mxu0 %v1339_v7  ;;  %1543 = vmatpush.bf16.msra.mxu1 %v1339_v7 }
  0x2a   : > { %1544 = vmatpush.bf16.msra.mxu2 %v1339_v7  ;;  %1545 = vmatpush.bf16.msra.mxu3 %v1339_v7 }
  0x2c   : > { %382 = vmatmul.bf16.vlgmr.msra.gmra.mxu0 %v1331_v8  ;;  %392 = vmatmul.bf16.vlgmr.msra.gmra.mxu1 %v1333_v9 }
  0x2d   : > { %402 = vmatmul.bf16.vlgmr.msra.gmra.mxu2 %v1335_v10  ;;  %412 = vmatmul.bf16.vlgmr.msra.gmra.mxu3 %v1337_v11 }
  0x3c   : > { %387 = vmatmul.bf16.gmra.mxu0 %v1332_v12  ;;  %397 = vmatmul.bf16.gmra.mxu1 %v1334_v13 }
  0x3d   : > { %407 = vmatmul.bf16.gmra.mxu2 %v1336_v14  ;;  %417 = vmatmul.bf16.gmra.mxu3 %v1338_v15 }
  0xa9   : > { %v383_v16 = vpop.f32.mrf.mxu0  ;;  %v393_v17 = vpop.f32.mrf.mxu1 }
  0xaa   : > { %1642 = vtanh.f32 %v383_v16 }
  0xab   : > { %1644 = vtanh.f32 %v393_v17 }
  0xb0   : > { %v403_v18 = vpop.f32.mrf.mxu2  ;;  %v413_v19 = vpop.f32.mrf.mxu3 }
  0xb1   : > { %v385_v20 = vpop.f32.mrf.mxu0  ;;  %v395_v21 = vpop.f32.mrf.mxu1 }
  0xb2   : > { %1646 = vtanh.f32 %v385_v20  ;;  %v1643_v22 = vpop.eup %1642 }
  0xb3   : > { %1648 = vtanh.f32 %v395_v21  ;;  %v1645_v23 = vpop.eup %1644 }
  0xb4   : > { %1650 = vtanh.f32 %v403_v18 }
  0xb5   : > { %1652 = vtanh.f32 %v413_v19 }
  0xb8   : > { %v405_v24 = vpop.f32.mrf.mxu2  ;;  %v415_v25 = vpop.f32.mrf.mxu3 }
  0xb9   : > { %v1647_v26 = vpop.eup %1646  ;;  %1654 = vtanh.f32 %v405_v24  ;;  %v388_v27 = vpop.f32.mrf.mxu0 }
  0xba   : > { %v398_v28 = vpop.f32.mrf.mxu1  ;;  %v1649_v29 = vpop.eup %1648  ;;  %v1383_v30 = vpack.c.bf16 %v1647_v26, %v1643_v22  ;;  %1656 = vtanh.f32 %v415_v25 }
  0xbb   : > { %v1393_v31 = vpack.c.bf16 %v1649_v29, %v1645_v23  ;;  %v1651_v32 = vpop.eup %1650  ;;  %1658 = vtanh.f32 %v388_v27 }
  0xbc   : > { %1384 = vst [vmem:[#allocation2] sm:$0xff] %v1383_v30   ;;  %v1653_v33 = vpop.eup %1652  ;;  %1660 = vtanh.f32 %v398_v28 }
  0xbd   : > { %1501 = vst [vmem:[#allocation2 + $0x10] sm:$0xff] %v1393_v31  }
  0xbf   : > { %v1655_v34 = vpop.eup %1654 }
  0xc0   : > { %v1657_v35 = vpop.eup %1656  ;;  %v1403_v36 = vpack.c.bf16 %v1655_v34, %v1651_v32  ;;  %v408_v37 = vpop.f32.mrf.mxu2 }
  0xc1   : > { %v418_v38 = vpop.f32.mrf.mxu3  ;;  %v1413_v39 = vpack.c.bf16 %v1657_v35, %v1653_v33  ;;  %v390_v40 = vpop.f32.mrf.mxu0 }
  0xc2   : > { %v400_v41 = vpop.f32.mrf.mxu1  ;;  %1503 = vst [vmem:[#allocation2 + $0x20] sm:$0xff] %v1403_v36   ;;  %1662 = vtanh.f32 %v390_v40  ;;  %v1659_v42 = vpop.eup %1658 }
  0xc3   : > { %1505 = vst [vmem:[#allocation2 + $0x30] sm:$0xff] %v1413_v39   ;;  %1664 = vtanh.f32 %v400_v41  ;;  %v1661_v43 = vpop.eup %1660 }
  0xc4   : > { %1666 = vtanh.f32 %v408_v37 }
  0xc5   : > { %1668 = vtanh.f32 %v418_v38 }
  0xc8   : > { %v410_v44 = vpop.f32.mrf.mxu2  ;;  %v1663_v46 = vpop.eup %1662 }
  0xc9   : > { %v420_v45 = vpop.f32.mrf.mxu3  ;;  %1670 = vtanh.f32 %v410_v44  ;;  %v1665_v47 = vpop.eup %1664  ;;  %v1388_v48 = vpack.c.bf16 %v1663_v46, %v1659_v42 }
  0xca   : > { %1672 = vtanh.f32 %v420_v45  ;;  %v1398_v49 = vpack.c.bf16 %v1665_v47, %v1661_v43  ;;  %v1667_v50 = vpop.eup %1666 }
  0xcb   : > { %1500 = vst [vmem:[#allocation2 + $0x8] sm:$0xff] %v1388_v48   ;;  %v1669_v51 = vpop.eup %1668 }
  0xcc   : > { %1502 = vst [vmem:[#allocation2 + $0x18] sm:$0xff] %v1398_v49  }
  0xcf   : > { %v1671_v52 = vpop.eup %1670 }
  0xd0   : > { %v1673_v53 = vpop.eup %1672  ;;  %v1408_v54 = vpack.c.bf16 %v1671_v52, %v1667_v50 }
  0xd1   : > { %v1418_v55 = vpack.c.bf16 %v1673_v53, %v1669_v51 }
  0xd2   : > { %1504 = vst [vmem:[#allocation2 + $0x28] sm:$0xff] %v1408_v54  }
  0xd3   : > { %1506 = vst [vmem:[#allocation2 + $0x38] sm:$0xff] %v1418_v55  }
  0xd4 PF: > { %p487_p5 = scmp.lt.s32.totalorder %s1752_s18, 0  ;;  %s488_s8 = ssub.s32 0, %s1752_s18  ;;  %v1347_v0 = vld [vmem:[%s2089_s4] sm:$0xff]  ;;  %v1349_v1 = vld [vmem:[%s2089_s4 + $0x10] sm:$0xff]  ;;  %v1348_v4 = vld [vmem:[%s2089_s4 + $0x8] sm:$0xff] }
  0xd5   : > { %s1175_s9 = smin.u32 %s1752_s18, %s488_s8  ;;  %v1351_v2 = vld [vmem:[%s2089_s4 + $0x20] sm:$0xff]  ;;  %v1353_v3 = vld [vmem:[%s2089_s4 + $0x30] sm:$0xff]  ;;  %v1350_v5 = vld [vmem:[%s2089_s4 + $0x18] sm:$0xff]  ;;  %p1244_p7 = scmp.ne.s32.totalorder %s1752_s18, 0 }
  0xd6   : > { %s490_s10 = sand.u32 1, %s1175_s9   ;;  %v1352_v6 = vld [vmem:[%s2089_s4 + $0x28] sm:$0xff]  ;;  %v1354_v7 = vld [vmem:[%s2089_s4 + $0x38] sm:$0xff] }
  0xd7   : > { %s491_s11 = ssub.s32 0, %s490_s10 }
  0xd8   : > { %s2096_s11 = smov (!%p487_p5, %s491_s11), %s490_s10 }
  0xd9   : > { %p1177_p6 = scmp.lt.s32.totalorder %s2096_s11, 0  ;;  %s497_s12 = sadd.s32 2, %s2096_s11 }
  0xdb   : > { %s2098_s12 = smov (!%p1177_p6, %s497_s12), %s2096_s11 }
  0xdc   : > { %s1355_s13 = sshll.u32 %s2098_s12, 6 }
  0xdd   : > { %s1864_s14 = scalar_lea.vmem [#allocation2], %s1355_s13 }
  0xde   : > { %v1363_v56 = vld [vmem:[%s1864_s14 + $0x38] sm:$0xff]  ;;  %v1362_v57 = vld [vmem:[%s1864_s14 + $0x30] sm:$0xff]  ;;  %v1361_v58 = vld [vmem:[%s1864_s14 + $0x28] sm:$0xff] }
  0xdf   : > { %614 = vmatpush.bf16.msra.mxu0 %v1363_v56  ;;  %1546 = vmatpush.bf16.msra.mxu1 %v1363_v56  ;;  %v1360_v59 = vld [vmem:[%s1864_s14 + $0x20] sm:$0xff]  ;;  %v1359_v60 = vld [vmem:[%s1864_s14 + $0x18] sm:$0xff]  ;;  %v1358_v61 = vld [vmem:[%s1864_s14 + $0x10] sm:$0xff] }
  0xe0   : > { %1547 = vmatpush.bf16.msra.mxu2 %v1363_v56  ;;  %1548 = vmatpush.bf16.msra.mxu3 %v1363_v56  ;;  %v1357_v62 = vld [vmem:[%s1864_s14 + $0x8] sm:$0xff]  ;;  %v1356_v63 = vld [vmem:[%s1864_s14] sm:$0xff] }
  0xe3   : > { %615 = vmatpush.bf16.msra.mxu0 %v1362_v57  ;;  %1549 = vmatpush.bf16.msra.mxu1 %v1362_v57 }
  0xe4   : > { %1550 = vmatpush.bf16.msra.mxu2 %v1362_v57  ;;  %1551 = vmatpush.bf16.msra.mxu3 %v1362_v57 }
  0xe7   : > { %616 = vmatpush.bf16.msra.mxu0 %v1361_v58  ;;  %1552 = vmatpush.bf16.msra.mxu1 %v1361_v58 }
  0xe8   : > { %1553 = vmatpush.bf16.msra.mxu2 %v1361_v58  ;;  %1554 = vmatpush.bf16.msra.mxu3 %v1361_v58 }
  0xeb   : > { %617 = vmatpush.bf16.msra.mxu0 %v1360_v59  ;;  %1555 = vmatpush.bf16.msra.mxu1 %v1360_v59 }
  0xec   : > { %1556 = vmatpush.bf16.msra.mxu2 %v1360_v59  ;;  %1557 = vmatpush.bf16.msra.mxu3 %v1360_v59 }
  0xef   : > { %618 = vmatpush.bf16.msra.mxu0 %v1359_v60  ;;  %1558 = vmatpush.bf16.msra.mxu1 %v1359_v60 }
  0xf0   : > { %1559 = vmatpush.bf16.msra.mxu2 %v1359_v60  ;;  %1560 = vmatpush.bf16.msra.mxu3 %v1359_v60 }
  0xf3   : > { %619 = vmatpush.bf16.msra.mxu0 %v1358_v61  ;;  %1561 = vmatpush.bf16.msra.mxu1 %v1358_v61 }
  0xf4   : > { %1562 = vmatpush.bf16.msra.mxu2 %v1358_v61  ;;  %1563 = vmatpush.bf16.msra.mxu3 %v1358_v61 }
  0xf7   : > { %620 = vmatpush.bf16.msra.mxu0 %v1357_v62  ;;  %1564 = vmatpush.bf16.msra.mxu1 %v1357_v62 }
  0xf8   : > { %1565 = vmatpush.bf16.msra.mxu2 %v1357_v62  ;;  %1566 = vmatpush.bf16.msra.mxu3 %v1357_v62 }
  0xfb   : > { %621 = vmatpush.bf16.msra.mxu0 %v1356_v63  ;;  %1567 = vmatpush.bf16.msra.mxu1 %v1356_v63 }
  0xfc   : > { %1568 = vmatpush.bf16.msra.mxu2 %v1356_v63  ;;  %1569 = vmatpush.bf16.msra.mxu3 %v1356_v63 }
  0xfe   : > { %622 = vmatmul.bf16.vlgmr.msra.gmra.mxu0 %v1347_v0  ;;  %632 = vmatmul.bf16.vlgmr.msra.gmra.mxu1 %v1349_v1 }
  0xff   : > { %642 = vmatmul.bf16.vlgmr.msra.gmra.mxu2 %v1351_v2  ;;  %652 = vmatmul.bf16.vlgmr.msra.gmra.mxu3 %v1353_v3 }
 0x10e   : > { %627 = vmatmul.bf16.gmra.mxu0 %v1348_v4  ;;  %637 = vmatmul.bf16.gmra.mxu1 %v1350_v5 }
 0x10f   : > { %647 = vmatmul.bf16.gmra.mxu2 %v1352_v6  ;;  %657 = vmatmul.bf16.gmra.mxu3 %v1354_v7 }
 0x17b   : > { %v1898_v8 = vpop.f32.mrf.mxu0  ;;  %v1900_v9 = vpop.f32.mrf.mxu1 }
 0x182   : > { %v1902_v10 = vpop.f32.mrf.mxu2  ;;  %v1904_v11 = vpop.f32.mrf.mxu3 }
 0x183   : > { %v1906_v12 = vpop.f32.mrf.mxu0  ;;  %v1908_v13 = vpop.f32.mrf.mxu1 }
 0x18a   : > { %v1910_v14 = vpop.f32.mrf.mxu2  ;;  %v1912_v15 = vpop.f32.mrf.mxu3 }
 0x18b   : > { %v1914_v16 = vpop.f32.mrf.mxu0  ;;  %v1916_v17 = vpop.f32.mrf.mxu1 }
 0x192   : > { %v1918_v18 = vpop.f32.mrf.mxu2  ;;  %v1920_v19 = vpop.f32.mrf.mxu3 }
 0x193   : > { %v1922_v20 = vpop.f32.mrf.mxu0  ;;  %v1924_v21 = vpop.f32.mrf.mxu1 }
 0x196   : > { %666 = sbr.rel (%p1244_p7) target bundleno = 611 (0x263), region = 48 }
 0x19a   : > { %v1926_v22 = vpop.f32.mrf.mxu2  ;;  %v1928_v23 = vpop.f32.mrf.mxu3 }
 0x19b   : > { %v1371_v24 = vld [vmem:[%s2087_s2 + $0x38] sm:$0xff]  ;;  %v1370_v25 = vld [vmem:[%s2087_s2 + $0x30] sm:$0xff]  ;;  %v1369_v26 = vld [vmem:[%s2087_s2 + $0x28] sm:$0xff]  ;;  %v667_v32 = vpack.c.bf16 %v1906_v12, %v1898_v8  ;;  %v669_v33 = vpack.c.bf16 %v1908_v13, %v1900_v9  ;;  %v671_v34 = vpack.c.bf16 %v1910_v14, %v1902_v10  ;;  %v673_v35 = vpack.c.bf16 %v1912_v15, %v1904_v11 }
 0x19c   : > { %739 = vmatpush.bf16.msra.mxu0 %v1371_v24  ;;  %1570 = vmatpush.bf16.msra.mxu1 %v1371_v24  ;;  %v1368_v27 = vld [vmem:[%s2087_s2 + $0x20] sm:$0xff]  ;;  %v1367_v28 = vld [vmem:[%s2087_s2 + $0x18] sm:$0xff]  ;;  %v1366_v29 = vld [vmem:[%s2087_s2 + $0x10] sm:$0xff]  ;;  %v668_v36 = vpack.c.bf16 %v1922_v20, %v1914_v16  ;;  %v670_v37 = vpack.c.bf16 %v1924_v21, %v1916_v17  ;;  %v672_v38 = vpack.c.bf16 %v1926_v22, %v1918_v18 }
 0x19d   : > { %1571 = vmatpush.bf16.msra.mxu2 %v1371_v24  ;;  %1572 = vmatpush.bf16.msra.mxu3 %v1371_v24  ;;  %v1365_v30 = vld [vmem:[%s2087_s2 + $0x8] sm:$0xff]  ;;  %v1364_v31 = vld [vmem:[%s2087_s2] sm:$0xff]  ;;  %v674_v39 = vpack.c.bf16 %v1928_v23, %v1920_v19 }
 0x1a0   : > { %740 = vmatpush.bf16.msra.mxu0 %v1370_v25  ;;  %1573 = vmatpush.bf16.msra.mxu1 %v1370_v25 }
 0x1a1   : > { %1574 = vmatpush.bf16.msra.mxu2 %v1370_v25  ;;  %1575 = vmatpush.bf16.msra.mxu3 %v1370_v25 }
 0x1a4   : > { %741 = vmatpush.bf16.msra.mxu0 %v1369_v26  ;;  %1576 = vmatpush.bf16.msra.mxu1 %v1369_v26 }
 0x1a5   : > { %1577 = vmatpush.bf16.msra.mxu2 %v1369_v26  ;;  %1578 = vmatpush.bf16.msra.mxu3 %v1369_v26 }
 0x1a8   : > { %742 = vmatpush.bf16.msra.mxu0 %v1368_v27  ;;  %1579 = vmatpush.bf16.msra.mxu1 %v1368_v27 }
 0x1a9   : > { %1580 = vmatpush.bf16.msra.mxu2 %v1368_v27  ;;  %1581 = vmatpush.bf16.msra.mxu3 %v1368_v27 }
 0x1ac   : > { %743 = vmatpush.bf16.msra.mxu0 %v1367_v28  ;;  %1582 = vmatpush.bf16.msra.mxu1 %v1367_v28 }
 0x1ad   : > { %1583 = vmatpush.bf16.msra.mxu2 %v1367_v28  ;;  %1584 = vmatpush.bf16.msra.mxu3 %v1367_v28 }
 0x1b0   : > { %744 = vmatpush.bf16.msra.mxu0 %v1366_v29  ;;  %1585 = vmatpush.bf16.msra.mxu1 %v1366_v29 }
 0x1b1   : > { %1586 = vmatpush.bf16.msra.mxu2 %v1366_v29  ;;  %1587 = vmatpush.bf16.msra.mxu3 %v1366_v29 }
 0x1b4   : > { %745 = vmatpush.bf16.msra.mxu0 %v1365_v30  ;;  %1588 = vmatpush.bf16.msra.mxu1 %v1365_v30 }
 0x1b5   : > { %1589 = vmatpush.bf16.msra.mxu2 %v1365_v30  ;;  %1590 = vmatpush.bf16.msra.mxu3 %v1365_v30 }
 0x1b8   : > { %746 = vmatpush.bf16.msra.mxu0 %v1364_v31  ;;  %1591 = vmatpush.bf16.msra.mxu1 %v1364_v31 }
 0x1b9   : > { %1592 = vmatpush.bf16.msra.mxu2 %v1364_v31  ;;  %1593 = vmatpush.bf16.msra.mxu3 %v1364_v31 }
 0x1bb   : > { %747 = vmatmul.bf16.vlgmr.msra.gmra.mxu0 %v667_v32  ;;  %757 = vmatmul.bf16.vlgmr.msra.gmra.mxu1 %v669_v33 }
 0x1bc   : > { %767 = vmatmul.bf16.vlgmr.msra.gmra.mxu2 %v671_v34  ;;  %777 = vmatmul.bf16.vlgmr.msra.gmra.mxu3 %v673_v35 }
 0x1cb   : > { %752 = vmatmul.bf16.gmra.mxu0 %v668_v36  ;;  %762 = vmatmul.bf16.gmra.mxu1 %v670_v37 }
 0x1cc   : > { %772 = vmatmul.bf16.gmra.mxu2 %v672_v38  ;;  %782 = vmatmul.bf16.gmra.mxu3 %v674_v39 }
 0x238   : > { %v748_v40 = vpop.f32.mrf.mxu0  ;;  %v758_v41 = vpop.f32.mrf.mxu1 }
 0x239   : > { %1674 = vtanh.f32 %v748_v40 }
 0x23a   : > { %1676 = vtanh.f32 %v758_v41 }
 0x23f   : > { %v768_v42 = vpop.f32.mrf.mxu2  ;;  %v778_v43 = vpop.f32.mrf.mxu3 }
 0x240   : > { %v750_v44 = vpop.f32.mrf.mxu0  ;;  %v760_v45 = vpop.f32.mrf.mxu1 }
 0x241   : > { %1678 = vtanh.f32 %v750_v44  ;;  %v1675_v46 = vpop.eup %1674 }
 0x242   : > { %1680 = vtanh.f32 %v760_v45  ;;  %v1677_v47 = vpop.eup %1676 }
 0x243   : > { %1682 = vtanh.f32 %v768_v42 }
 0x244   : > { %1684 = vtanh.f32 %v778_v43 }
 0x247   : > { %v770_v48 = vpop.f32.mrf.mxu2  ;;  %v780_v49 = vpop.f32.mrf.mxu3 }
 0x248   : > { %v1679_v50 = vpop.eup %1678  ;;  %1686 = vtanh.f32 %v770_v48  ;;  %v753_v51 = vpop.f32.mrf.mxu0 }
 0x249   : > { %v763_v52 = vpop.f32.mrf.mxu1  ;;  %v1681_v53 = vpop.eup %1680  ;;  %v1423_v54 = vpack.c.bf16 %v1679_v50, %v1675_v46  ;;  %1688 = vtanh.f32 %v780_v49 }
 0x24a   : > { %v1433_v55 = vpack.c.bf16 %v1681_v53, %v1677_v47  ;;  %v1683_v56 = vpop.eup %1682  ;;  %1690 = vtanh.f32 %v753_v51 }
 0x24b   : > { %1507 = vst [vmem:[#allocation2 + $0x40] sm:$0xff] %v1423_v54   ;;  %v1685_v57 = vpop.eup %1684  ;;  %1692 = vtanh.f32 %v763_v52 }
 0x24c   : > { %1509 = vst [vmem:[#allocation2 + $0x50] sm:$0xff] %v1433_v55  }
 0x24e   : > { %v1687_v58 = vpop.eup %1686 }
 0x24f   : > { %v1689_v59 = vpop.eup %1688  ;;  %v1443_v60 = vpack.c.bf16 %v1687_v58, %v1683_v56  ;;  %v773_v61 = vpop.f32.mrf.mxu2 }
 0x250   : > { %v783_v62 = vpop.f32.mrf.mxu3  ;;  %v1453_v63 = vpack.c.bf16 %v1689_v59, %v1685_v57  ;;  %v755_v0 = vpop.f32.mrf.mxu0 }
 0x251   : > { %v765_v1 = vpop.f32.mrf.mxu1  ;;  %1511 = vst [vmem:[#allocation2 + $0x60] sm:$0xff] %v1443_v60   ;;  %1694 = vtanh.f32 %v755_v0  ;;  %v1691_v2 = vpop.eup %1690 }
 0x252   : > { %1513 = vst [vmem:[#allocation2 + $0x70] sm:$0xff] %v1453_v63   ;;  %1696 = vtanh.f32 %v765_v1  ;;  %v1693_v3 = vpop.eup %1692 }
 0x253   : > { %1698 = vtanh.f32 %v773_v61 }
 0x254   : > { %1700 = vtanh.f32 %v783_v62 }
 0x257   : > { %v775_v4 = vpop.f32.mrf.mxu2  ;;  %v1695_v6 = vpop.eup %1694 }
 0x258   : > { %v785_v5 = vpop.f32.mrf.mxu3  ;;  %1702 = vtanh.f32 %v775_v4  ;;  %v1697_v7 = vpop.eup %1696  ;;  %v1428_v24 = vpack.c.bf16 %v1695_v6, %v1691_v2 }
 0x259   : > { %1704 = vtanh.f32 %v785_v5  ;;  %v1438_v25 = vpack.c.bf16 %v1697_v7, %v1693_v3  ;;  %v1699_v26 = vpop.eup %1698 }
 0x25a   : > { %1508 = vst [vmem:[#allocation2 + $0x48] sm:$0xff] %v1428_v24   ;;  %v1701_v27 = vpop.eup %1700 }
 0x25b   : > { %1510 = vst [vmem:[#allocation2 + $0x58] sm:$0xff] %v1438_v25  }
 0x25e   : > { %v1703_v28 = vpop.eup %1702 }
 0x25f   : > { %v1705_v29 = vpop.eup %1704  ;;  %v1448_v30 = vpack.c.bf16 %v1703_v28, %v1699_v26 }
 0x260   : > { %v1458_v31 = vpack.c.bf16 %v1705_v29, %v1701_v27 }
 0x261   : > { %1512 = vst [vmem:[#allocation2 + $0x68] sm:$0xff] %v1448_v30  }
 0x262   : > { %1514 = vst [vmem:[#allocation2 + $0x78] sm:$0xff] %v1458_v31  }
 0x263 PF: > { %p1293_p8 = scmp.ne.s32.totalorder %s1752_s18, 1 }
 0x265   : > { %844 = sbr.rel (%p1293_p8) target bundleno = 818 (0x332), region = 52 }
 0x26a   : > { %v1379_v32 = vld [vmem:[%s2088_s3 + $0x38] sm:$0xff]  ;;  %v1378_v33 = vld [vmem:[%s2088_s3 + $0x30] sm:$0xff]  ;;  %v1377_v34 = vld [vmem:[%s2088_s3 + $0x28] sm:$0xff]  ;;  %v845_v40 = vpack.c.bf16 %v1906_v12, %v1898_v8  ;;  %v847_v41 = vpack.c.bf16 %v1908_v13, %v1900_v9  ;;  %v849_v42 = vpack.c.bf16 %v1910_v14, %v1902_v10  ;;  %v851_v43 = vpack.c.bf16 %v1912_v15, %v1904_v11 }
 0x26b   : > { %917 = vmatpush.bf16.msra.mxu0 %v1379_v32  ;;  %1594 = vmatpush.bf16.msra.mxu1 %v1379_v32  ;;  %v1376_v35 = vld [vmem:[%s2088_s3 + $0x20] sm:$0xff]  ;;  %v1375_v36 = vld [vmem:[%s2088_s3 + $0x18] sm:$0xff]  ;;  %v1374_v37 = vld [vmem:[%s2088_s3 + $0x10] sm:$0xff]  ;;  %v846_v44 = vpack.c.bf16 %v1922_v20, %v1914_v16  ;;  %v848_v45 = vpack.c.bf16 %v1924_v21, %v1916_v17  ;;  %v850_v46 = vpack.c.bf16 %v1926_v22, %v1918_v18 }
 0x26c   : > { %1595 = vmatpush.bf16.msra.mxu2 %v1379_v32  ;;  %1596 = vmatpush.bf16.msra.mxu3 %v1379_v32  ;;  %v1373_v38 = vld [vmem:[%s2088_s3 + $0x8] sm:$0xff]  ;;  %v1372_v39 = vld [vmem:[%s2088_s3] sm:$0xff]  ;;  %v852_v47 = vpack.c.bf16 %v1928_v23, %v1920_v19 }
 0x26f   : > { %918 = vmatpush.bf16.msra.mxu0 %v1378_v33  ;;  %1597 = vmatpush.bf16.msra.mxu1 %v1378_v33 }
 0x270   : > { %1598 = vmatpush.bf16.msra.mxu2 %v1378_v33  ;;  %1599 = vmatpush.bf16.msra.mxu3 %v1378_v33 }
 0x273   : > { %919 = vmatpush.bf16.msra.mxu0 %v1377_v34  ;;  %1600 = vmatpush.bf16.msra.mxu1 %v1377_v34 }
 0x274   : > { %1601 = vmatpush.bf16.msra.mxu2 %v1377_v34  ;;  %1602 = vmatpush.bf16.msra.mxu3 %v1377_v34 }
 0x277   : > { %920 = vmatpush.bf16.msra.mxu0 %v1376_v35  ;;  %1603 = vmatpush.bf16.msra.mxu1 %v1376_v35 }
 0x278   : > { %1604 = vmatpush.bf16.msra.mxu2 %v1376_v35  ;;  %1605 = vmatpush.bf16.msra.mxu3 %v1376_v35 }
 0x27b   : > { %921 = vmatpush.bf16.msra.mxu0 %v1375_v36  ;;  %1606 = vmatpush.bf16.msra.mxu1 %v1375_v36 }
 0x27c   : > { %1607 = vmatpush.bf16.msra.mxu2 %v1375_v36  ;;  %1608 = vmatpush.bf16.msra.mxu3 %v1375_v36 }
 0x27f   : > { %922 = vmatpush.bf16.msra.mxu0 %v1374_v37  ;;  %1609 = vmatpush.bf16.msra.mxu1 %v1374_v37 }
 0x280   : > { %1610 = vmatpush.bf16.msra.mxu2 %v1374_v37  ;;  %1611 = vmatpush.bf16.msra.mxu3 %v1374_v37 }
 0x283   : > { %923 = vmatpush.bf16.msra.mxu0 %v1373_v38  ;;  %1612 = vmatpush.bf16.msra.mxu1 %v1373_v38 }
 0x284   : > { %1613 = vmatpush.bf16.msra.mxu2 %v1373_v38  ;;  %1614 = vmatpush.bf16.msra.mxu3 %v1373_v38 }
 0x287   : > { %924 = vmatpush.bf16.msra.mxu0 %v1372_v39  ;;  %1615 = vmatpush.bf16.msra.mxu1 %v1372_v39 }
 0x288   : > { %1616 = vmatpush.bf16.msra.mxu2 %v1372_v39  ;;  %1617 = vmatpush.bf16.msra.mxu3 %v1372_v39 }
 0x28a   : > { %925 = vmatmul.bf16.vlgmr.msra.gmra.mxu0 %v845_v40  ;;  %935 = vmatmul.bf16.vlgmr.msra.gmra.mxu1 %v847_v41 }
 0x28b   : > { %945 = vmatmul.bf16.vlgmr.msra.gmra.mxu2 %v849_v42  ;;  %955 = vmatmul.bf16.vlgmr.msra.gmra.mxu3 %v851_v43 }
 0x29a   : > { %930 = vmatmul.bf16.gmra.mxu0 %v846_v44  ;;  %940 = vmatmul.bf16.gmra.mxu1 %v848_v45 }
 0x29b   : > { %950 = vmatmul.bf16.gmra.mxu2 %v850_v46  ;;  %960 = vmatmul.bf16.gmra.mxu3 %v852_v47 }
 0x307   : > { %v926_v48 = vpop.f32.mrf.mxu0  ;;  %v936_v49 = vpop.f32.mrf.mxu1 }
 0x308   : > { %1706 = vtanh.f32 %v926_v48 }
 0x309   : > { %1708 = vtanh.f32 %v936_v49 }
 0x30e   : > { %v946_v50 = vpop.f32.mrf.mxu2  ;;  %v956_v51 = vpop.f32.mrf.mxu3 }
 0x30f   : > { %v928_v52 = vpop.f32.mrf.mxu0  ;;  %v938_v53 = vpop.f32.mrf.mxu1 }
 0x310   : > { %1710 = vtanh.f32 %v928_v52  ;;  %v1707_v54 = vpop.eup %1706 }
 0x311   : > { %1712 = vtanh.f32 %v938_v53  ;;  %v1709_v55 = vpop.eup %1708 }
 0x312   : > { %1714 = vtanh.f32 %v946_v50 }
 0x313   : > { %1716 = vtanh.f32 %v956_v51 }
 0x316   : > { %v948_v56 = vpop.f32.mrf.mxu2  ;;  %v958_v57 = vpop.f32.mrf.mxu3 }
 0x317   : > { %v1711_v58 = vpop.eup %1710  ;;  %1718 = vtanh.f32 %v948_v56  ;;  %v931_v59 = vpop.f32.mrf.mxu0 }
 0x318   : > { %v941_v60 = vpop.f32.mrf.mxu1  ;;  %v1713_v61 = vpop.eup %1712  ;;  %v1463_v62 = vpack.c.bf16 %v1711_v58, %v1707_v54  ;;  %1720 = vtanh.f32 %v958_v57 }
 0x319   : > { %v1473_v63 = vpack.c.bf16 %v1713_v61, %v1709_v55  ;;  %v1715_v0 = vpop.eup %1714  ;;  %1722 = vtanh.f32 %v931_v59 }
 0x31a   : > { %1464 = vst [vmem:[#allocation2] sm:$0xff] %v1463_v62   ;;  %v1717_v1 = vpop.eup %1716  ;;  %1724 = vtanh.f32 %v941_v60 }
 0x31b   : > { %1516 = vst [vmem:[#allocation2 + $0x10] sm:$0xff] %v1473_v63  }
 0x31d   : > { %v1719_v2 = vpop.eup %1718 }
 0x31e   : > { %v1721_v3 = vpop.eup %1720  ;;  %v1483_v4 = vpack.c.bf16 %v1719_v2, %v1715_v0  ;;  %v951_v5 = vpop.f32.mrf.mxu2 }
 0x31f   : > { %v961_v6 = vpop.f32.mrf.mxu3  ;;  %v1493_v7 = vpack.c.bf16 %v1721_v3, %v1717_v1  ;;  %v933_v24 = vpop.f32.mrf.mxu0 }
 0x320   : > { %v943_v25 = vpop.f32.mrf.mxu1  ;;  %1518 = vst [vmem:[#allocation2 + $0x20] sm:$0xff] %v1483_v4   ;;  %1726 = vtanh.f32 %v933_v24  ;;  %v1723_v26 = vpop.eup %1722 }
 0x321   : > { %1520 = vst [vmem:[#allocation2 + $0x30] sm:$0xff] %v1493_v7   ;;  %1728 = vtanh.f32 %v943_v25  ;;  %v1725_v27 = vpop.eup %1724 }
 0x322   : > { %1730 = vtanh.f32 %v951_v5 }
 0x323   : > { %1732 = vtanh.f32 %v961_v6 }
 0x326   : > { %v953_v28 = vpop.f32.mrf.mxu2  ;;  %v1727_v30 = vpop.eup %1726 }
 0x327   : > { %v963_v29 = vpop.f32.mrf.mxu3  ;;  %1734 = vtanh.f32 %v953_v28  ;;  %v1729_v31 = vpop.eup %1728  ;;  %v1468_v32 = vpack.c.bf16 %v1727_v30, %v1723_v26 }
 0x328   : > { %1736 = vtanh.f32 %v963_v29  ;;  %v1478_v33 = vpack.c.bf16 %v1729_v31, %v1725_v27  ;;  %v1731_v34 = vpop.eup %1730 }
 0x329   : > { %1515 = vst [vmem:[#allocation2 + $0x8] sm:$0xff] %v1468_v32   ;;  %v1733_v35 = vpop.eup %1732 }
 0x32a   : > { %1517 = vst [vmem:[#allocation2 + $0x18] sm:$0xff] %v1478_v33  }
 0x32d   : > { %v1735_v36 = vpop.eup %1734 }
 0x32e   : > { %v1737_v37 = vpop.eup %1736  ;;  %v1488_v38 = vpack.c.bf16 %v1735_v36, %v1731_v34 }
 0x32f   : > { %v1498_v39 = vpack.c.bf16 %v1737_v37, %v1733_v35 }
 0x330   : > { %1519 = vst [vmem:[#allocation2 + $0x28] sm:$0xff] %v1488_v38  }
 0x331   : > { %1521 = vst [vmem:[#allocation2 + $0x38] sm:$0xff] %v1498_v39  }
 0x332 PF: > { %1018 = vst [vmem:[%s2090_s5] sm:$0xff] %v1898_v8 }
 0x333   : > { %1019 = vst [vmem:[%s2090_s5 + $0x8] sm:$0xff] %v1906_v12 }
 0x334   : > { %1020 = vst [vmem:[%s2090_s5 + $0x10] sm:$0xff] %v1914_v16 }
 0x335   : > { %1021 = vst [vmem:[%s2090_s5 + $0x18] sm:$0xff] %v1922_v20 }
 0x336   : > { %1022 = vst [vmem:[%s2090_s5 + $0x20] sm:$0xff] %v1900_v9 }
 0x337   : > { %1023 = vst [vmem:[%s2090_s5 + $0x28] sm:$0xff] %v1908_v13 }
 0x338   : > { %1024 = vst [vmem:[%s2090_s5 + $0x30] sm:$0xff] %v1916_v17 }
 0x339   : > { %1025 = vst [vmem:[%s2090_s5 + $0x38] sm:$0xff] %v1924_v21 }
 0x33a   : > { %1026 = vst [vmem:[%s2090_s5 + $0x40] sm:$0xff] %v1902_v10 }
 0x33b   : > { %1027 = vst [vmem:[%s2090_s5 + $0x48] sm:$0xff] %v1910_v14 }
 0x33c   : > { %1028 = vst [vmem:[%s2090_s5 + $0x50] sm:$0xff] %v1918_v18 }
 0x33d   : > { %1029 = vst [vmem:[%s2090_s5 + $0x58] sm:$0xff] %v1926_v22 }
 0x33e   : > { %1030 = vst [vmem:[%s2090_s5 + $0x60] sm:$0xff] %v1904_v11 }
 0x33f   : > { %1031 = vst [vmem:[%s2090_s5 + $0x68] sm:$0xff] %v1912_v15 }
 0x340   : > { %1032 = vst [vmem:[%s2090_s5 + $0x70] sm:$0xff] %v1920_v19 }
 0x341   : > { %1033 = vst [vmem:[%s2090_s5 + $0x78] sm:$0xff] %v1928_v23 }
 0x342 PF: > { %s15_s20 = sadd.s32 1, %s1760_s20   ;;  %s2091_s18 = smov %s1756_s19 }
 0x343   : > { %p12_p9 = scmp.ge.s32.totalorder %s15_s20, 5   ;;  %s2092_s19 = smov %s2094_s21 }
 0x345   :  { %14 = sbr.rel (!%p12_p9) target bundleno = 2 (0x2), region = 85 }

</bundles_post_ra>
